<compile_context>
chip_gen: v6e
topology: v6e:2x2x1
jax: 0.10.0
libtpu: 0.0.40
codegen_flags: <defaults>
</compile_context>

<pallas_src>
import jax
import jax.numpy as jnp
from jax.experimental import pallas as pl
from jax.experimental.pallas import tpu as pltpu


# ---------------------------------------------------------------------------
# Kernels
# ---------------------------------------------------------------------------

def _softmax_kernel(s_ref, p_ref):
    """p = softmax(s, axis=-1) over the spatial dim; math in f32, stored in x.dtype."""
    s = s_ref[0].astype(jnp.float32)                     # [K, HW]
    s = s - jnp.max(s, axis=-1, keepdims=True)
    e = jnp.exp(s)
    p_ref[0] = (e / jnp.sum(e, axis=-1, keepdims=True)).astype(p_ref.dtype)


def _gather_kernel(p_ref, x_ref, o_ref):
    # p_ref: [TB, K, HW], x_ref: [TB, TF, HW]  ->  o_ref: [TB, K, TF]
    # Contract HW on both operands (no explicit transpose); F lands on lanes.
    o_ref[...] = jnp.einsum(
        "bks,bfs->bkf", p_ref[...], x_ref[...],
        preferred_element_type=jnp.float32,
    ).astype(o_ref.dtype)


def _gather_mask_kernel(p_ref, x_ref, m_ref, at_ref, o_ref):
    # p_ref: [TB, K, HW], x_ref: [TB, TF, HW], m_ref: [TB, K, 1], at_ref: [K, TF]
    res = jnp.einsum(
        "bks,bfs->bkf", p_ref[...], x_ref[...],
        preferred_element_type=jnp.float32,
    )                                                    # [TB, K, TF] f32
    m = m_ref[...].astype(jnp.float32)                   # [TB, K, 1], lane-broadcasts
    a = at_ref[...].astype(jnp.float32)[None, :, :]      # [1,  K, TF]
    o_ref[...] = (m * res + (1.0 - m) * a).astype(o_ref.dtype)


# ---------------------------------------------------------------------------
# Tiling / VMEM budgeting
# ---------------------------------------------------------------------------

def _vmem_budgets():
    """Generation-aware VMEM budgets (v5e/v6e: 128 MiB, v7x: 64 MiB per TC)."""
    cap = 64 * 1024 * 1024  # conservative fallback (v7x per-core)
    try:
        info = pltpu.get_tpu_info()
        c = getattr(info, "vmem_capacity_bytes", None)
        if c:
            cap = int(c)
    except Exception:
        pass
    tile_budget = int(cap * 0.55)   # used by our own double-buffer accounting
    vmem_limit = int(cap * 0.75)    # scoped-VMEM cap handed to Mosaic
    return tile_budget, vmem_limit


def _choose_tiles(B, F, K, HW, x_item, out_item, budget):
    """Pick (TB, TF) so double-buffered blocks fit `budget` bytes.

    TF is the output *lane* dim -> multiple of 128 (or == F).  TB > 1 only when
    a whole F fits in one block (small-problem path: fold batches per step).
    """
    def step_bytes(tb, tf):
        x_blk = tb * tf * HW * x_item          # image_coding tile
        p_blk = tb * K * HW * x_item           # softmaxed attention tile
        o_blk = tb * K * tf * out_item         # output tile
        a_blk = K * tf * 4 + K * 4             # a_t + mask (masked path, f32)
        return 2 * (x_blk + p_blk + o_blk + a_blk)   # double-buffered

    if step_bytes(1, F) <= budget:
        tf = F
        per_b = 2 * (F * HW * x_item + K * HW * x_item + K * F * out_item)
        fixed = 2 * (K * F * 4 + K * 4)
        tb = max(1, min(B, (budget - fixed) // max(per_b, 1)))
        return int(tb), int(tf)

    denom = 2 * (HW * x_item + K * out_item + K * 4)
    tf = (budget - 2 * K * HW * x_item) // max(denom, 1)
    tf = max(128, (tf // 128) * 128)
    tf = min(tf, F)
    return 1, int(tf)


# ---------------------------------------------------------------------------
# Wrapper
# ---------------------------------------------------------------------------

def gather_forward(image_coding, s_att, att_mask=None, a_param=None):
    """Pallas equivalent of Gather.forward.

    image_coding: [B, F, H, W], s_att: [B, K, H, W]
    att_mask (optional): [B, K], a_param (optional): [F, K]
    returns: [B, F, K]
    """
    B, F, H, W = image_coding.shape
    B2, K, H2, W2 = s_att.shape
    assert B == B2 and H == H2 and W == W2
    HW = H * W

    x = image_coding.reshape(B, F, HW)
    s = s_att.reshape(B, K, HW)
    x_item = jnp.dtype(x.dtype).itemsize
    out_dtype = image_coding.dtype
    out_item = jnp.dtype(out_dtype).itemsize

    tile_budget, vmem_limit = _vmem_budgets()

    # ---- stage 1: p = softmax(s) over HW, emitted in x.dtype ----------------
    # Tiny relative to the x stream (K << F); hoisting it out of the gather
    # kernel removes all cross-step state so both gather grid axes can be
    # "parallel" (v7x megacore can split the F loop, not just the batch loop).
    p = pl.pallas_call(
        _softmax_kernel,
        out_shape=jax.ShapeDtypeStruct((B, K, HW), x.dtype),
        grid_spec=pltpu.PrefetchScalarGridSpec(
            num_scalar_prefetch=0,
            grid=(B,),
            in_specs=[pl.BlockSpec((1, K, HW), lambda b: (b, 0, 0))],
            out_specs=pl.BlockSpec((1, K, HW), lambda b: (b, 0, 0)),
        ),
        compiler_params=pltpu.CompilerParams(
            dimension_semantics=("parallel",),
            vmem_limit_bytes=vmem_limit,
        ),
        cost_estimate=pl.CostEstimate(
            flops=4 * B * K * HW,
            transcendentals=B * K * HW,
            bytes_accessed=B * K * HW * (jnp.dtype(s.dtype).itemsize + x_item),
        ),
    )(s)

    # ---- stage 2: gather = p @ x^T, emitted lane-dense as [B, K, F] ---------
    TB, TF = _choose_tiles(B, F, K, HW, x_item, out_item, tile_budget)
    NB, NF = pl.cdiv(B, TB), pl.cdiv(F, TF)

    cparams = pltpu.CompilerParams(
        dimension_semantics=("parallel", "parallel"),   # no cross-step state
        vmem_limit_bytes=vmem_limit,
    )
    flops = 2 * B * F * HW * K
    base_bytes = (B * F * HW * x_item          # image_coding
                  + B * K * HW * x_item        # p (resident across the F axis)
                  + B * F * K * out_item)      # output

    # Ragged trailing tiles (B % TB, F % TF) compute on padded data which is
    # discarded on masked writeback; padded rows never reach the result.
    p_spec = pl.BlockSpec((TB, K, HW), lambda b, f: (b, 0, 0))    # resident over F
    x_spec = pl.BlockSpec((TB, TF, HW), lambda b, f: (b, f, 0))
    # TODO(synk): on v7x, sweep pipeline_mode=pl.Buffered(3) on x_spec (depth-2 kept here).
    o_spec = pl.BlockSpec((TB, K, TF), lambda b, f: (b, 0, f))
    out_shape = jax.ShapeDtypeStruct((B, K, F), out_dtype)

    if att_mask is None:
        out_kf = pl.pallas_call(
            _gather_kernel,
            out_shape=out_shape,
            grid_spec=pltpu.PrefetchScalarGridSpec(
                num_scalar_prefetch=0,
                grid=(NB, NF),
                in_specs=[p_spec, x_spec],
                out_specs=o_spec,
            ),
            compiler_params=cparams,
            cost_estimate=pl.CostEstimate(
                flops=flops, transcendentals=0, bytes_accessed=base_bytes),
        )(p, x)
    else:
        assert a_param is not None and a_param.shape == (F, K)
        assert att_mask.shape == (B, K)
        mask3 = att_mask.reshape(B, K, 1)                 # lane-broadcast in kernel
        a_t = jnp.transpose(a_param, (1, 0))              # [K, F], lane-dense like out
        m_spec = pl.BlockSpec((TB, K, 1), lambda b, f: (b, 0, 0))
        a_spec = pl.BlockSpec((K, TF), lambda b, f: (0, f))   # batch-independent
        out_kf = pl.pallas_call(
            _gather_mask_kernel,
            out_shape=out_shape,
            grid_spec=pltpu.PrefetchScalarGridSpec(
                num_scalar_prefetch=0,
                grid=(NB, NF),
                in_specs=[p_spec, x_spec, m_spec, a_spec],
                out_specs=o_spec,
            ),
            compiler_params=cparams,
            cost_estimate=pl.CostEstimate(
                flops=flops + 3 * B * F * K,
                transcendentals=0,
                bytes_accessed=base_bytes
                + B * K * jnp.dtype(mask3.dtype).itemsize
                + F * K * jnp.dtype(a_t.dtype).itemsize),
        )(p, x, mask3, a_t)

    # Back to the module's [B, F, K] layout; costs only B*F*K bytes (<< x stream).
    return jnp.transpose(out_kf, (0, 2, 1))


# ---------------------------------------------------------------------------
# Reference + test
# ---------------------------------------------------------------------------

def gather_reference(image_coding, s_att, att_mask=None, a_param=None):
    B, F, H, W = image_coding.shape
    _, K, _, _ = s_att.shape
    HW = H * W
    p = jax.nn.softmax(s_att.reshape(B, K, HW), axis=2)          # [B, K, HW]
    s_new = jnp.transpose(p, (0, 2, 1))                          # [B, HW, K]
    res = jnp.einsum("bfs,bsk->bfk", image_coding.reshape(B, F, HW), s_new)
    if att_mask is not None:
        m = att_mask[:, None, :]                                 # [B, 1, K]
        res = m * res + (1.0 - m) * a_param[None, :, :]
    return res


if __name__ == "__main__":
    key = jax.random.PRNGKey(0)
    B, F, K, H, W = 2, 32, 8, 16, 16

    k1, k2, k3, k4 = jax.random.split(key, 4)
    image_coding = jax.random.normal(k1, (B, F, H, W), dtype=jnp.float32)
    s_att = jax.random.normal(k2, (B, K, H, W), dtype=jnp.float32) * 5.0
    # deterministic "parameter" a (as in nn.Parameter(torch.randn(F, K)))
    a_param = jax.random.normal(k3, (F, K), dtype=jnp.float32)
    # binary attention mask [B, K]
    att_mask = (jax.random.uniform(k4, (B, K)) > 0.5).astype(jnp.float32)

    TOL = 1e-4   # exact softmax division now -> tight tolerance

    # Path 1: use_mask=False
    out = jax.block_until_ready(gather_forward(image_coding, s_att))
    ref = gather_reference(image_coding, s_att)
    assert out.shape == (B, F, K)
    assert jnp.allclose(out, ref, atol=TOL, rtol=TOL), "mismatch (no mask)"

    # Path 2: use_mask=True
    out_m = jax.block_until_ready(
        gather_forward(image_coding, s_att, att_mask, a_param))
    ref_m = gather_reference(image_coding, s_att, att_mask, a_param)
    assert out_m.shape == (B, F, K)
    assert jnp.allclose(out_m, ref_m, atol=TOL, rtol=TOL), "mismatch (mask)"

    print("KERNEL_OK")
</pallas_src>

<mosaic_0001>
module attributes {stable_mosaic.version = 11 : i64} {
  func.func @_softmax_kernel(%arg0: i32, %arg1: memref<1x8x256xf32, #tpu.memory_space<vmem>>, %arg2: memref<1x8x256xf32, #tpu.memory_space<vmem>>) attributes {dimension_semantics = [#tpu.dimension_semantics<parallel>], iteration_bounds = array<i64: 2>, scalar_prefetch = 0 : i64, scratch_operands = 0 : i64, tpu.core_type = #tpu.core_type<tc>, window_params = [{transform_indices = @transform_0, window_bounds = array<i64: 1, 8, 256>}, {transform_indices = @transform_1, window_bounds = array<i64: 1, 8, 256>}]} {
    %c0 = arith.constant 0 : index
    %c0_0 = arith.constant 0 : index
    %c0_1 = arith.constant 0 : index
    %0 = vector.load %arg1[%c0, %c0_0, %c0_1] : memref<1x8x256xf32, #tpu.memory_space<vmem>>, vector<1x8x256xf32>
    %1 = vector.shape_cast %0 : vector<1x8x256xf32> to vector<8x256xf32>
    %cst = arith.constant dense<0xFF800000> : vector<8xf32>
    %2 = vector.multi_reduction <maximumf>, %1, %cst [1] : vector<8x256xf32> to vector<8xf32>
    %3 = vector.shape_cast %2 : vector<8xf32> to vector<8x1xf32>
    %4 = vector.broadcast %3 : vector<8x1xf32> to vector<8x256xf32>
    %5 = arith.subf %1, %4 : vector<8x256xf32>
    %6 = math.exp %5 : vector<8x256xf32>
    %cst_2 = arith.constant dense<0.000000e+00> : vector<8xf32>
    %7 = vector.multi_reduction <add>, %6, %cst_2 [1] : vector<8x256xf32> to vector<8xf32>
    %8 = vector.shape_cast %7 : vector<8xf32> to vector<8x1xf32>
    %9 = vector.broadcast %8 : vector<8x1xf32> to vector<8x256xf32>
    %10 = arith.divf %6, %9 : vector<8x256xf32>
    %c0_3 = arith.constant 0 : index
    %c0_4 = arith.constant 0 : index
    %c0_5 = arith.constant 0 : index
    %11 = vector.load %arg2[%c0_3, %c0_4, %c0_5] : memref<1x8x256xf32, #tpu.memory_space<vmem>>, vector<1x8x256xf32>
    %12 = vector.shape_cast %11 : vector<1x8x256xf32> to vector<8x256xf32>
    %13 = vector.shape_cast %10 : vector<8x256xf32> to vector<1x8x256xf32>
    tpu.vector_store %arg2[%c0_3, %c0_4, %c0_5], %13 {strides = array<i32>} : memref<1x8x256xf32, #tpu.memory_space<vmem>>, vector<1x8x256xf32>,
    return
  }
  func.func @transform_0(%arg0: i32) -> (i32, i32, i32) {
    %c0_i32 = arith.constant 0 : i32
    %c0_i32_0 = arith.constant 0 : i32
    %c0_i32_1 = arith.constant 0 : i32
    return %arg0, %c0_i32, %c0_i32_0 : i32, i32, i32
  }
  func.func @transform_1(%arg0: i32) -> (i32, i32, i32) {
    %c0_i32 = arith.constant 0 : i32
    %c0_i32_0 = arith.constant 0 : i32
    %c0_i32_1 = arith.constant 0 : i32
    return %arg0, %c0_i32, %c0_i32_0 : i32, i32, i32
  }
}

</mosaic_0001>

<bundles_post_ra>
// kernel: tpu_custom_call.1
= control target key start
LH: loop header
LB: loop body
LE: loop exit
PB: predicated region body
PF: predicated region fallthrough
CT: control target
= control target key end

     0   :  { %6 = vsyncpa [#allocation3], 0  ;;  %s558_s0 = inlined_call_operand.hbm [shape: f32[2,8,256], index: 0, kind: input, shape index: {}]   ;;  %s559_s1 = inlined_call_operand.hbm [shape: f32[2,8,256], index: 1, kind: output, shape index: {}]  }
   0x1   :  { %8 = vsyncpa [#allocation3 + $0x1], 0 }
   0x2   :  { %9 = vsyncpa [#allocation4], 0 }
   0x3   :  { %11 = vsyncpa [#allocation4 + $0x1], 0  ;;  %s411_s6 = smov 0   ;;  %s413_s7 = smov 0  }
   0x4   :  { %s415_s8 = smov 0   ;;  %s417_s9 = smov 0  }
   0x5 LB: > { %s432_s10 = sadd.s32 4294967295, %s397_s9   ;;  %s237_s11 = sadd.s32 4294967294, %s397_s9   ;;  %s397_s9 = sphi %s417_s9, %s576_s9   ;;  %s393_s8 = sphi %s415_s8, %s575_s8   ;;  %s389_s7 = sphi %s413_s7, %s574_s7   ;;  %s385_s6 = sphi %s411_s6, %s573_s6  }
   0x6   : > { %s436_s12 = sadd.s32 1, %s397_s9   ;;  %s24_s13 = sadd.s32 1, %s393_s8 }
   0x7   : > { %s21_s14 = ssub.s32 %s397_s9, %s436_s12  ;;  %p31_p0 = scmp.ne.s32.totalorder %s393_s8, %s389_s7 }
   0x8   : > { %p22_p1 = scmp.eq.s32.totalorder %s21_s14, 0  ;;  %p32_p2 = scmp.eq.s32.totalorder %s397_s9, 0 }
   0x9   : > { %p37_p3 = scmp.ne.s32.totalorder %s389_s7, %s385_s6  ;;  %p38_p4 = scmp.eq.s32.totalorder %s432_s10, 0 }
   0xa   : > { %s448_s15 = scalar_select %p22_p1, %s393_s8, %s24_s13  }
   0xb   : > { %p450_p5 = por %p32_p2, %p31_p0  ;;  %p454_p6 = por %p38_p4, %p37_p3 }
   0xc   : > { %p61_p7 = scmp.eq.s32.totalorder %s432_s10, 1  ;;  %p67_p8 = scmp.eq.s32.totalorder %s237_s11, 1 }
   0xd   : > { %s563_s17 = scalar_select %p454_p6, 1, 0 }
   0xe   : > { %p265_p10 = scmp.lt.s32.totalorder %s397_s9, 2  ;;  %p461_p11 = por %p61_p7, %p31_p0 }
   0xf   : > { %p465_p12 = por %p67_p8, %p37_p3  ;;  %s87_s20 = sand.u32 1, %s393_s8  }
  0x10   : > { %s564_s18 = scalar_select %p461_p11, 1, 0 }
  0x11   : > { %s565_s19 = scalar_select %p465_p12, 1, 0 }
  0x12   : > { %s251_s21 = sshll.u32 %s397_s9, 8  ;;  %s240_s22 = sshll.u32 %s87_s20, 4 }
  0x13   : > { %s474_s25 = scalar_lea.hbm %s558_s0, %s251_s21  ;;  %s91_s26 = scalar_lea.vmem [#allocation2], %s240_s22 }
  0x14   : > { %s99_s27 = sshll.u32 %s91_s26, 4  ;;  %p478_p13 = pnand %p265_p10, %p450_p5  ;;  %s482_s27 = int_to_ptr.vmem [resolvable:$true] %s99_s27 }
  0x15   : > { %s88_s29 = scalar_lea.sflag [#allocation3], %s87_s20  ;;  %s305_s30 = scalar_lea.hbm %s474_s25, 256 }
  0x16   : > { %p306_p2 = scmp.ne.s32.totalorder %s474_s25, %s305_s30  ;;  %p307_p3 = pneg %p478_p13 }
  0x17   : > { %s310_s4 = scalar_lea.hbm %s558_s0, 512  ;;  %p311_p5 = scmp.lt.s32.totalorder %s474_s25, %s558_s0 }
  0x18   : > { %p308_p4 = pnand %p307_p3, %p306_p2  ;;  %p312_p8 = scmp.lt.s32.totalorder %s310_s4, %s305_s30 }
  0x1a   : > { %p309_p7 = pneg %p308_p4  ;;  %p313_p10 = por %p312_p8, %p311_p5 }
  0x1c   : > { %p314_p9 = pnand %p313_p10, %p309_p7 }
  0x1e   : > { %317 = shalt.err (!%p314_p9)
}
  0x1f   : > { %s318_s13 = scalar_lea.vmem %s482_s27, 256  ;;  %s399_s14 = smov [#allocation2]  }
  0x20   : > { %p319_p0 = scmp.ne.s32.totalorder %s482_s27, %s318_s13  ;;  %s323_s16 = sshll.u32 %s399_s14, 4  ;;  %s324_s16 = int_to_ptr.vmem [resolvable:$false] %s323_s16 }
  0x21   : > { %s325_s20 = scalar_lea.vmem %s324_s16, 512  ;;  %p326_p4 = scmp.lt.s32.totalorder %s482_s27, %s324_s16 }
  0x22   : > { %p321_p1 = pnand %p319_p0, %p307_p3  ;;  %p327_p12 = scmp.lt.s32.totalorder %s325_s20, %s318_s13 }
  0x24   : > { %p322_p2 = pneg %p321_p1  ;;  %p328_p11 = por %p327_p12, %p326_p4 }
  0x26   : > { %p329_p6 = pnand %p328_p11, %p322_p2 }
  0x28   : > { %332 = shalt.err (!%p329_p6)
}
  0x29   : > { %260 = dma.hbm_to_vmem [thread:$0]  (!%p478_p13), %s474_s25, 256, %s482_s27, %s88_s29  }
  0x2a   : > { %p567_p9 = scmp.lt.s32.totalorder %s397_s9, 3  ;;  %p568_p7 = scmp.ge.s32.totalorder %s397_s9, 1 }
  0x2c   : > { %p105_p0 = pnand %p568_p7, %p567_p9 }
  0x2d   : > { %s509_s21 = sand.u32 (!%p105_p0), 1, %s389_s7   ;;  %p569_p6 = scmp.ne.s32.totalorder (!%p105_p0), %s563_s17, 0 }
  0x2e   : > { %108 = sbr.rel (%p105_p0) target bundleno = 381 (0x17d), region = 24  ;;  %s244_s22 = sshll.u32 (!%p105_p0), %s509_s21, 4 }
  0x2f   : > { %s111_s23 = scalar_lea.sflag (!%p105_p0), [#allocation3], %s509_s21  ;;  %s114_s24 = scalar_lea.vmem (!%p105_p0), [#allocation2], %s244_s22 }
  0x33   : > { %376 = dma.done.wait (%p569_p6), %s111_s23, 256  }
  0x34   : > { %378 = vsyncadd (%p569_p6), %s111_s23, 4294967040  ;;  %v133_v0 = vld [vmem:[%s114_s24] sm:$0xff]  ;;  %v134_v1 = vld [vmem:[%s114_s24 + $0x8] sm:$0xff]  ;;  %s252_s17 = sshll.u32 %s432_s10, 8  ;;  %s132_s25 = scalar_lea.vmem [#allocation5], %s244_s22 }
  0x35   : > { %v135_v2 = vmax.f32 %v133_v0, %v134_v1  ;;  %s167_s26 = sshll.u32 %s132_s25, 4  ;;  %s521_s29 = scalar_lea.hbm %s559_s1, %s252_s17  ;;  %s168_s26 = int_to_ptr.vmem [resolvable:$true] %s167_s26 }
  0x36   : > { %s153_s30 = scalar_lea.sflag [#allocation4], %s509_s21  ;;  %s333_s2 = scalar_lea.vmem %s168_s26, 256 }
  0x37   : > { %136 = vmax.xlane.f32.xlu0 %v135_v2  ;;  %p334_p11 = scmp.ne.s32.totalorder %s168_s26, %s333_s2  ;;  %p570_p12 = scmp.ne.s32.totalorder %s564_s18, 0 }
  0x38   : > { %s400_s10 = smov [#allocation5]  }
  0x39   : > { %p335_p13 = pnand %p334_p11, %p570_p12  ;;  %s337_s3 = sshll.u32 %s400_s10, 4  ;;  %s338_s3 = int_to_ptr.vmem [resolvable:$false] %s337_s3 }
  0x3a   : > { %s339_s4 = scalar_lea.vmem %s338_s3, 512  ;;  %p340_p3 = scmp.lt.s32.totalorder %s168_s26, %s338_s3 }
  0x3b   : > { %p336_p1 = pneg %p335_p13  ;;  %p341_p5 = scmp.lt.s32.totalorder %s339_s4, %s333_s2 }
  0x3d   : > { %p342_p8 = por %p341_p5, %p340_p3 }
  0x3f   : > { %p343_p10 = pnand %p342_p8, %p336_p1 }
  0xc0   : > { %v137_v3 = vpop.xlane.xlu0 %136 }
  0xc1   : > { %v138_v4 = vsub.f32 %v133_v0, %v137_v3  ;;  %v139_v5 = vsub.f32 %v134_v1, %v137_v3 }
  0xc3   : > { %v140_v6 = vmul.f32 1.442695, %v138_v4  ;;  %v142_v7 = vmul.f32 1.442695, %v139_v5 }
  0xc5   : > { %299 = vpow2.f32 %v140_v6 }
  0xc6   : > { %301 = vpow2.f32 %v142_v7 }
  0xd2   : > { %v300_v8 = vpop.eup %299 }
  0xd3   : > { %v302_v9 = vpop.eup %301 }
  0xd4   : > { %v144_v10 = vadd.f32 %v302_v9, %v300_v8 }
  0xd6   : > { %145 = vadd.xlane.f32.xlu0 %v144_v10 }
 0x15f   : > { %v146_v11 = vpop.xlane.xlu0 %145 }
 0x160   : > { %303 = vrcp.f32 %v146_v11 }
 0x16d   : > { %v304_v12 = vpop.eup %303 }
 0x16e   : > { %v148_v13 = vmul.f32 %v304_v12, %v300_v8  ;;  %v149_v14 = vmul.f32 %v304_v12, %v302_v9 }
 0x170   : > { %150 = vst [vmem:[%s132_s25] sm:$0xff] %v148_v13  ;;  %151 = vst [vmem:[%s132_s25 + $0x8] sm:$0xff] %v149_v14 }
 0x171   : > { %346 = shalt.err (!%p343_p10)
}
 0x172   : > { %s347_s5 = scalar_lea.hbm %s521_s29, 256  ;;  %s351_s14 = scalar_lea.hbm %s559_s1, 512 }
 0x173   : > { %p348_p2 = scmp.ne.s32.totalorder %s521_s29, %s347_s5  ;;  %p352_p7 = scmp.lt.s32.totalorder %s521_s29, %s559_s1 }
 0x174   : > { %p353_p0 = scmp.lt.s32.totalorder %s351_s14, %s347_s5 }
 0x175   : > { %p349_p4 = pnand %p348_p2, %p570_p12 }
 0x176   : > { %p354_p6 = por %p353_p0, %p352_p7 }
 0x177   : > { %p350_p9 = pneg %p349_p4 }
 0x179   : > { %p355_p11 = pnand %p354_p6, %p350_p9 }
 0x17b   : > { %358 = shalt.err (!%p355_p11)
}
 0x17c   : > { %255 = dma.vmem_to_hbm [thread:$0]  (%p570_p12), %s168_s26, 256, %s521_s29, %s153_s30  }
 0x17d PF: > { %s179_s21 = sand.u32 1, %s385_s6   ;;  %p571_p13 = scmp.ne.s32.totalorder %s565_s19, 0 }
 0x17e   : > { %p572_p1 = scmp.ge.s32.totalorder %s397_s9, 2  ;;  %s180_s22 = scalar_lea.sflag [#allocation4], %s179_s21 }
 0x180   : > { %p262_p3 = pnand %p572_p1, %p571_p13 }
 0x182   : > { %p263_p5 = pneg %p262_p3 }
 0x184   : > { %380 = dma.done.wait (%p263_p5), %s180_s22, 256  }
 0x185   : > { %382 = vsyncadd (%p263_p5), %s180_s22, 4294967040  ;;  %p14_p8 = scmp.ge.s32.totalorder %s436_s12, 4   ;;  %s573_s6 = smov %s389_s7 }
 0x186   : > { %s574_s7 = smov %s393_s8  ;;  %s575_s8 = smov %s448_s15 }
 0x187   : > { %s576_s9 = smov %s436_s12  ;;  %16 = sbr.rel (!%p14_p8) target bundleno = 5 (0x5), region = 69 }
 0x18c   :  { %185 = vsyncpa [#allocation3], 1 }
 0x18d   :  { %187 = vsyncpa [#allocation3 + $0x1], 1 }
 0x18e   :  { %188 = vsyncpa [#allocation4], 1 }
 0x18f   :  { %190 = vsyncpa [#allocation4 + $0x1], 1 }

</bundles_post_ra>
